<compile_context>
chip_gen: v7x
topology: tpu7x:2x2x1
jax: 0.10.0
libtpu: 0.0.40
codegen_flags: <defaults>
</compile_context>

<pallas_src>
import functools

import jax
import jax.numpy as jnp
from jax.experimental import pallas as pl
from jax.experimental.pallas import tpu as pltpu


# ---------------------------------------------------------------------------
# Shared gate math (center-tap FC1 -> ReLU -> FC2 -> sigmoid), column layout.
# ---------------------------------------------------------------------------
def _se_gate_from_mean(mean_col, w1t, b1r, w2c, b2c):
    """mean_col: (C, 1) f32 column. Returns the gate as a (C, 1) f32 column.

    h = relu(W1 @ mean + b1): column-broadcast over lanes + sublane reduce.
    g = sigmoid(W2 @ h + b2): row-broadcast over sublanes + lane reduce.
    Pure VPU/XLU row/column math — keeps the tiny matvecs off the MXU and the
    result in column (sublane) layout for the per-channel broadcast over L.
    """
    h = jnp.sum(w1t * mean_col, axis=0, keepdims=True) + b1r      # (1, Cr)
    h = jnp.maximum(h, 0.0)
    g = jnp.sum(w2c * h, axis=-1, keepdims=True) + b2c            # (C, 1)
    return jax.nn.sigmoid(g)


# ---------------------------------------------------------------------------
# Fused single-pass kernel: squeeze + gate + excite, one HBM read of x.
# ---------------------------------------------------------------------------
def se_fused_kernel(x_ref, w1t_ref, b1_ref, w2_ref, b2_ref, o_ref, *,
                    inv_len, f32_math):
    # Squeeze: per-channel mean over L with f32 accumulation, kept as a column.
    mean = jnp.sum(x_ref[...].astype(jnp.float32), axis=-1,
                   keepdims=True) * inv_len                        # (1, C, 1)
    g = _se_gate_from_mean(mean[0], w1t_ref[...], b1_ref[...],
                           w2_ref[...], b2_ref[...])               # (C, 1)
    gate = g[None]                                                 # (1, C, 1)
    if f32_math:
        xf = x_ref[...].astype(jnp.float32)
        o_ref[...] = (xf * gate + gate).astype(o_ref.dtype)
    else:
        # bf16-native excite math (v6e/v7x VALUs): cast the gate down once.
        gate = gate.astype(o_ref.dtype)
        o_ref[...] = x_ref[...] * gate + gate


# ---------------------------------------------------------------------------
# Two-pass fallback, pass 1: tiled squeeze + gate.
# ---------------------------------------------------------------------------
def se_gate_kernel(x_ref, w1t_ref, b1_ref, w2_ref, b2_ref, g_ref, acc_ref, *,
                   inv_len, seq_len, lt, ragged):
    li = pl.program_id(1)

    @pl.when(li == 0)
    def _init():
        acc_ref[...] = jnp.zeros_like(acc_ref)

    x = x_ref[...].astype(jnp.float32)                             # (1, C, lt)
    if ragged:
        # cdiv grid: zero out lanes past the end of the sequence (last tile).
        lane = jax.lax.broadcasted_iota(jnp.int32, x.shape, 2)
        x = jnp.where(lane < (seq_len - li * lt), x, 0.0)

    # Lane-preserving partial sums: VPU adds over the lt/128 lane groups each
    # tile; the single cross-lane (XLU) reduce happens once per batch below.
    partial = x[:, :, 0:128]
    for i in range(1, lt // 128):
        partial = partial + x[:, :, i * 128:(i + 1) * 128]
    acc_ref[...] += partial                                        # (1, C, 128)

    @pl.when(li == pl.num_programs(1) - 1)
    def _finalize():
        mean = jnp.sum(acc_ref[...], axis=-1, keepdims=True) * inv_len  # (1,C,1)
        g = _se_gate_from_mean(mean[0], w1t_ref[...], b1_ref[...],
                               w2_ref[...], b2_ref[...])           # (C, 1)
        g_ref[...] = g[None].astype(g_ref.dtype)                   # (1, C, 1)


# ---------------------------------------------------------------------------
# Two-pass fallback, pass 2: elementwise excitation out = x * g + g.
# ---------------------------------------------------------------------------
def se_excite_kernel(x_ref, g_ref, o_ref, *, f32_math):
    if f32_math:
        x = x_ref[...].astype(jnp.float32)
        g = g_ref[...]                                             # (1, ct, 1) f32
        o_ref[...] = (x * g + g).astype(o_ref.dtype)
    else:
        g = g_ref[...].astype(o_ref.dtype)                         # bf16-native
        o_ref[...] = x_ref[...] * g + g


# ---------------------------------------------------------------------------
# Sizing helpers (generation- and dtype-aware).
# ---------------------------------------------------------------------------
def _tpu_vmem_capacity():
    try:
        return int(pltpu.get_tpu_info().vmem_capacity_bytes)
    except Exception:
        return 64 * 1024 * 1024   # conservative default (v7x per-TC VMEM)


def _pick_tile(dim, candidates):
    """Largest candidate that exactly tiles `dim`; falls back to the full dim."""
    for t in candidates:
        if t <= dim and dim % t == 0:
            return t
    return dim


def _choose_lt(L, C, itemsize, block_cap):
    """Lane-dense (multiple-of-128) L tile so a (C, lt) block fits block_cap."""
    max_lt = (block_cap // max(C * itemsize, 1)) // 128 * 128
    max_lt = max(max_lt, 128)
    max_lt = min(max_lt, pl.cdiv(L, 128) * 128)
    if L % 128 == 0:
        t = min(L, max_lt)
        while t >= 128:
            if L % t == 0:
                return t, False          # exact tiling, no tail masking needed
            t -= 128
        return 128, False
    return max_lt, True                  # cdiv grid; mask the tail in pass 1


# ---------------------------------------------------------------------------
# Paths.
# ---------------------------------------------------------------------------
def _se_fused(x, w1t, b1r, w2c, b2c, *, f32_math, vmem_limit):
    N, C, L = x.shape
    Cr = w1t.shape[1]
    kernel = functools.partial(se_fused_kernel, inv_len=1.0 / L,
                               f32_math=f32_math)
    return pl.pallas_call(
        kernel,
        out_shape=jax.ShapeDtypeStruct((N, C, L), x.dtype),
        grid_spec=pltpu.PrefetchScalarGridSpec(
            num_scalar_prefetch=0,
            grid=(N,),
            in_specs=[
                pl.BlockSpec((1, C, L), lambda n: (n, 0, 0)),
                pl.BlockSpec((C, Cr), lambda n: (0, 0)),
                pl.BlockSpec((1, Cr), lambda n: (0, 0)),
                pl.BlockSpec((C, Cr), lambda n: (0, 0)),
                pl.BlockSpec((C, 1), lambda n: (0, 0)),
            ],
            out_specs=pl.BlockSpec((1, C, L), lambda n: (n, 0, 0)),
        ),
        compiler_params=pltpu.CompilerParams(
            dimension_semantics=("parallel",),
            vmem_limit_bytes=vmem_limit),
    )(x, w1t, b1r, w2c, b2c)


def _se_two_pass(x, w1t, b1r, w2c, b2c, *, f32_math, budget, vmem_limit,
                 itemsize):
    N, C, L = x.shape
    Cr = w1t.shape[1]

    # Pass-2 keeps 2x input + 2x output blocks live -> cap one block at ~1/5.
    block_cap = max(budget // 5, 128 * 128 * itemsize)
    lt, ragged = _choose_lt(L, C, itemsize, block_cap)
    num_l = pl.cdiv(L, lt)

    # ---- Pass 1: squeeze + gate -> (N, C, 1) f32 column ----
    gate = pl.pallas_call(
        functools.partial(se_gate_kernel, inv_len=1.0 / L, seq_len=L,
                          lt=lt, ragged=ragged),
        out_shape=jax.ShapeDtypeStruct((N, C, 1), jnp.float32),
        grid_spec=pltpu.PrefetchScalarGridSpec(
            num_scalar_prefetch=0,
            grid=(N, num_l),                      # reduction (L) axis last
            in_specs=[
                pl.BlockSpec((1, C, lt), lambda n, l: (n, 0, l)),
                pl.BlockSpec((C, Cr), lambda n, l: (0, 0)),
                pl.BlockSpec((1, Cr), lambda n, l: (0, 0)),
                pl.BlockSpec((C, Cr), lambda n, l: (0, 0)),
                pl.BlockSpec((C, 1), lambda n, l: (0, 0)),
            ],
            out_specs=pl.BlockSpec((1, C, 1), lambda n, l: (n, 0, 0)),
            scratch_shapes=[pltpu.VMEM((1, C, 128), jnp.float32)],
        ),
        compiler_params=pltpu.CompilerParams(
            dimension_semantics=("parallel", "arbitrary"),
            vmem_limit_bytes=vmem_limit),
    )(x, w1t, b1r, w2c, b2c)

    # ---- Pass 2: excitation, lane-dense tiles, all axes parallel ----
    ct = _pick_tile(C, (512, 256, 128, 64, 32, 16, 8))
    out = pl.pallas_call(
        functools.partial(se_excite_kernel, f32_math=f32_math),
        out_shape=jax.ShapeDtypeStruct((N, C, L), x.dtype),
        grid_spec=pltpu.PrefetchScalarGridSpec(
            num_scalar_prefetch=0,
            grid=(N, C // ct, num_l),
            in_specs=[
                pl.BlockSpec((1, ct, lt), lambda n, ci, li: (n, ci, li)),
                pl.BlockSpec((1, ct, 1), lambda n, ci, li: (n, ci, 0)),
            ],
            out_specs=pl.BlockSpec((1, ct, lt), lambda n, ci, li: (n, ci, li)),
        ),
        compiler_params=pltpu.CompilerParams(
            dimension_semantics=("parallel", "parallel", "parallel"),
            vmem_limit_bytes=vmem_limit),
    )(x, gate)
    return out


# ---------------------------------------------------------------------------
# Public wrapper.
# ---------------------------------------------------------------------------
def se_module_pallas(x, w1_full, b1, w2_full, b2):
    """x: (N, C, L). w1_full: (Cr, C, 3), b1: (Cr,), w2_full: (C, Cr, 3), b2: (C,)."""
    N, C, L = x.shape
    Cr = w1_full.shape[0]

    # With a length-1, pad-1 input only the center tap (k index 1) of the 3-tap
    # conv kernels ever multiplies real data -> dense layers on the C axis.
    w1t = jnp.transpose(w1_full[:, :, 1], (1, 0))   # (C, Cr): C on sublanes
    w2c = w2_full[:, :, 1]                          # (C, Cr)
    b1r = b1.reshape(1, Cr)                         # row bias
    b2c = b2.reshape(C, 1)                          # column bias

    itemsize = x.dtype.itemsize
    cap = _tpu_vmem_capacity()
    budget = int(cap * 0.45)          # bytes allowed for live pipeline buffers
    vmem_limit = int(cap * 0.75)
    f32_math = x.dtype == jnp.float32

    slab_bytes = C * L * itemsize
    weight_bytes = 2 * 4 * (2 * C * Cr + Cr + C)    # double-buffered f32 params
    fused_live = 4 * slab_bytes + weight_bytes      # 2x in + 2x out blocks
    if not f32_math:
        fused_live += C * L * 4                     # f32 squeeze temporaries

    if fused_live <= budget:
        # Fused path: x is read from HBM exactly once (2 traffic units total).
        return _se_fused(x, w1t, b1r, w2c, b2c, f32_math=f32_math,
                         vmem_limit=vmem_limit)
    # Large slabs: two streaming passes (read x twice, write once).
    return _se_two_pass(x, w1t, b1r, w2c, b2c, f32_math=f32_math,
                        budget=budget, vmem_limit=vmem_limit,
                        itemsize=itemsize)


def se_module_ref(x, w1_full, b1, w2_full, b2):
    """Pure-JAX reference mirroring the PyTorch forward."""
    s = jnp.mean(x, axis=-1, keepdims=True)                           # (N, C, 1)
    h = jnp.einsum('oc,ncl->nol', w1_full[:, :, 1], s) + b1[None, :, None]
    h = jnp.maximum(h, 0.0)
    g = jnp.einsum('oc,ncl->nol', w2_full[:, :, 1], h) + b2[None, :, None]
    g = jax.nn.sigmoid(g)
    return x * g + x * 0 + g if False else x * g + g


if __name__ == "__main__":
    N, C, L = 2, 64, 1024
    reduction = 16
    Cr = C // reduction

    key = jax.random.PRNGKey(0)
    kx, k1, k2, k3, k4 = jax.random.split(key, 5)

    x = jax.random.normal(kx, (N, C, L), dtype=jnp.float32)
    # Conv1d(C, Cr, k=3) / Conv1d(Cr, C, k=3) parameter shapes from __init__.
    w1_full = 0.1 * jax.random.normal(k1, (Cr, C, 3), dtype=jnp.float32)
    b1 = 0.1 * jax.random.normal(k2, (Cr,), dtype=jnp.float32)
    w2_full = 0.1 * jax.random.normal(k3, (C, Cr, 3), dtype=jnp.float32)
    b2 = 0.1 * jax.random.normal(k4, (C,), dtype=jnp.float32)

    ref = se_module_ref(x, w1_full, b1, w2_full, b2)

    # 1) Default path: the (C, L) slab fits VMEM -> fused single-pass kernel.
    out = jax.block_until_ready(se_module_pallas(x, w1_full, b1, w2_full, b2))
    assert out.shape == (N, C, L)
    assert jnp.allclose(out, ref, atol=1e-5, rtol=1e-5), "fused path mismatch"

    # Shared params for exercising the large-slab fallback directly.
    w1t = jnp.transpose(w1_full[:, :, 1], (1, 0))
    w2c = w2_full[:, :, 1]
    b1r = b1.reshape(1, Cr)
    b2c = b2.reshape(C, 1)
    vmem_limit = int(_tpu_vmem_capacity() * 0.75)
    small_budget = 5 * C * 256 * 4     # forces lt = 256 -> several L tiles

    # 2) Forced two-pass fallback (aligned L): tiled squeeze accumulation.
    out2 = jax.block_until_ready(
        _se_two_pass(x, w1t, b1r, w2c, b2c, f32_math=True,
                     budget=small_budget, vmem_limit=vmem_limit, itemsize=4))
    assert jnp.allclose(out2, ref, atol=1e-5, rtol=1e-5), "two-pass mismatch"

    # 3) Forced two-pass fallback with ragged (non-128-multiple) L: exercises
    #    the cdiv grid + in-kernel tail masking of the squeeze.
    Lr = 1000
    xr = jax.random.normal(kx, (N, C, Lr), dtype=jnp.float32)
    refr = se_module_ref(xr, w1_full, b1, w2_full, b2)
    out3 = jax.block_until_ready(
        _se_two_pass(xr, w1t, b1r, w2c, b2c, f32_math=True,
                     budget=small_budget, vmem_limit=vmem_limit, itemsize=4))
    assert jnp.allclose(out3, refr, atol=1e-5, rtol=1e-5), "ragged two-pass mismatch"

    print("KERNEL_OK")
</pallas_src>

<mosaic_0001>
module attributes {stable_mosaic.version = 11 : i64} {
  func.func @se_fused_kernel(%arg0: i32, %arg1: memref<1x64x1024xf32, #tpu.memory_space<vmem>>, %arg2: memref<64x4xf32, #tpu.memory_space<vmem>>, %arg3: memref<1x4xf32, #tpu.memory_space<vmem>>, %arg4: memref<64x4xf32, #tpu.memory_space<vmem>>, %arg5: memref<64x1xf32, #tpu.memory_space<vmem>>, %arg6: memref<1x64x1024xf32, #tpu.memory_space<vmem>>) attributes {dimension_semantics = [#tpu.dimension_semantics<parallel>], iteration_bounds = array<i64: 2>, scalar_prefetch = 0 : i64, scratch_operands = 0 : i64, tpu.core_type = #tpu.core_type<tc>, window_params = [{transform_indices = @transform_0, window_bounds = array<i64: 1, 64, 1024>}, {pipeline_mode = #tpu.pipeline_mode<synchronous>, transform_indices = @transform_1, window_bounds = array<i64: 64, 4>}, {pipeline_mode = #tpu.pipeline_mode<synchronous>, transform_indices = @transform_2, window_bounds = array<i64: 1, 4>}, {pipeline_mode = #tpu.pipeline_mode<synchronous>, transform_indices = @transform_3, window_bounds = array<i64: 64, 4>}, {pipeline_mode = #tpu.pipeline_mode<synchronous>, transform_indices = @transform_4, window_bounds = array<i64: 64, 1>}, {transform_indices = @transform_5, window_bounds = array<i64: 1, 64, 1024>}]} {
    %c0 = arith.constant 0 : index
    %c0_0 = arith.constant 0 : index
    %c0_1 = arith.constant 0 : index
    %0 = vector.load %arg1[%c0, %c0_0, %c0_1] : memref<1x64x1024xf32, #tpu.memory_space<vmem>>, vector<1x64x1024xf32>
    %cst = arith.constant dense<0.000000e+00> : vector<1x64xf32>
    %1 = vector.multi_reduction <add>, %0, %cst [2] : vector<1x64x1024xf32> to vector<1x64xf32>
    %2 = vector.shape_cast %1 : vector<1x64xf32> to vector<1x64x1xf32>
    %cst_2 = arith.constant 9.765625E-4 : f32
    %3 = vector.broadcast %cst_2 : f32 to vector<1x64x1xf32>
    %4 = arith.mulf %2, %3 : vector<1x64x1xf32>
    %5 = vector.shape_cast %4 : vector<1x64x1xf32> to vector<64x1xf32>
    %c0_3 = arith.constant 0 : index
    %c0_4 = arith.constant 0 : index
    %6 = vector.load %arg2[%c0_3, %c0_4] : memref<64x4xf32, #tpu.memory_space<vmem>>, vector<64x4xf32>
    %c0_5 = arith.constant 0 : index
    %c0_6 = arith.constant 0 : index
    %7 = vector.load %arg3[%c0_5, %c0_6] : memref<1x4xf32, #tpu.memory_space<vmem>>, vector<1x4xf32>
    %c0_7 = arith.constant 0 : index
    %c0_8 = arith.constant 0 : index
    %8 = vector.load %arg4[%c0_7, %c0_8] : memref<64x4xf32, #tpu.memory_space<vmem>>, vector<64x4xf32>
    %c0_9 = arith.constant 0 : index
    %c0_10 = arith.constant 0 : index
    %9 = vector.load %arg5[%c0_9, %c0_10] : memref<64x1xf32, #tpu.memory_space<vmem>>, vector<64x1xf32>
    %10 = vector.broadcast %5 : vector<64x1xf32> to vector<64x4xf32>
    %11 = arith.mulf %6, %10 : vector<64x4xf32>
    %cst_11 = arith.constant dense<0.000000e+00> : vector<4xf32>
    %12 = vector.multi_reduction <add>, %11, %cst_11 [0] : vector<64x4xf32> to vector<4xf32>
    %13 = vector.shape_cast %12 : vector<4xf32> to vector<1x4xf32>
    %14 = arith.addf %13, %7 : vector<1x4xf32>
    %cst_12 = arith.constant 0.000000e+00 : f32
    %15 = vector.broadcast %cst_12 : f32 to vector<1x4xf32>
    %16 = arith.maximumf %14, %15 : vector<1x4xf32>
    %17 = vector.broadcast %16 : vector<1x4xf32> to vector<64x4xf32>
    %18 = arith.mulf %8, %17 : vector<64x4xf32>
    %cst_13 = arith.constant dense<0.000000e+00> : vector<64xf32>
    %19 = vector.multi_reduction <add>, %18, %cst_13 [1] : vector<64x4xf32> to vector<64xf32>
    %20 = vector.shape_cast %19 : vector<64xf32> to vector<64x1xf32>
    %21 = arith.addf %20, %9 : vector<64x1xf32>
    %22 = arith.negf %21 : vector<64x1xf32>
    %23 = math.exp %22 : vector<64x1xf32>
    %cst_14 = arith.constant 1.000000e+00 : f32
    %24 = vector.broadcast %cst_14 : f32 to vector<64x1xf32>
    %25 = arith.addf %24, %23 : vector<64x1xf32>
    %26 = arith.divf %24, %25 : vector<64x1xf32>
    %27 = vector.shape_cast %26 : vector<64x1xf32> to vector<1x64x1xf32>
    %c0_15 = arith.constant 0 : index
    %c0_16 = arith.constant 0 : index
    %c0_17 = arith.constant 0 : index
    %28 = vector.load %arg1[%c0_15, %c0_16, %c0_17] : memref<1x64x1024xf32, #tpu.memory_space<vmem>>, vector<1x64x1024xf32>
    %29 = vector.broadcast %27 : vector<1x64x1xf32> to vector<1x64x1024xf32>
    %30 = arith.mulf %28, %29 : vector<1x64x1024xf32>
    %31 = vector.broadcast %27 : vector<1x64x1xf32> to vector<1x64x1024xf32>
    %32 = arith.addf %30, %31 : vector<1x64x1024xf32>
    %c0_18 = arith.constant 0 : index
    %c0_19 = arith.constant 0 : index
    %c0_20 = arith.constant 0 : index
    %33 = vector.load %arg6[%c0_18, %c0_19, %c0_20] : memref<1x64x1024xf32, #tpu.memory_space<vmem>>, vector<1x64x1024xf32>
    tpu.vector_store %arg6[%c0_18, %c0_19, %c0_20], %32 {strides = array<i32>} : memref<1x64x1024xf32, #tpu.memory_space<vmem>>, vector<1x64x1024xf32>,
    return
  }
  func.func @transform_0(%arg0: i32) -> (i32, i32, i32) {
    %c0_i32 = arith.constant 0 : i32
    %c0_i32_0 = arith.constant 0 : i32
    %c0_i32_1 = arith.constant 0 : i32
    return %arg0, %c0_i32, %c0_i32_0 : i32, i32, i32
  }
  func.func @transform_1(%arg0: i32) -> (i32, i32) {
    %c0_i32 = arith.constant 0 : i32
    %c0_i32_0 = arith.constant 0 : i32
    %c0_i32_1 = arith.constant 0 : i32
    return %c0_i32, %c0_i32_0 : i32, i32
  }
  func.func @transform_2(%arg0: i32) -> (i32, i32) {
    %c0_i32 = arith.constant 0 : i32
    %c0_i32_0 = arith.constant 0 : i32
    %c0_i32_1 = arith.constant 0 : i32
    return %c0_i32, %c0_i32_0 : i32, i32
  }
  func.func @transform_3(%arg0: i32) -> (i32, i32) {
    %c0_i32 = arith.constant 0 : i32
    %c0_i32_0 = arith.constant 0 : i32
    %c0_i32_1 = arith.constant 0 : i32
    return %c0_i32, %c0_i32_0 : i32, i32
  }
  func.func @transform_4(%arg0: i32) -> (i32, i32) {
    %c0_i32 = arith.constant 0 : i32
    %c0_i32_0 = arith.constant 0 : i32
    %c0_i32_1 = arith.constant 0 : i32
    return %c0_i32, %c0_i32_0 : i32, i32
  }
  func.func @transform_5(%arg0: i32) -> (i32, i32, i32) {
    %c0_i32 = arith.constant 0 : i32
    %c0_i32_0 = arith.constant 0 : i32
    %c0_i32_1 = arith.constant 0 : i32
    return %arg0, %c0_i32, %c0_i32_0 : i32, i32, i32
  }
}

</mosaic_0001>

<bundles_post_ra>
// kernel: tpu_custom_call.1
= control target key start
LH: loop header
LB: loop body
LE: loop exit
PB: predicated region body
PF: predicated region fallthrough
CT: control target
= control target key end

     0   :  { %10 = vsyncpa [#allocation3], 0  ;;  %s1745_s0 = inlined_call_operand.hbm [shape: f32[2,64,1024], index: 0, kind: input, shape index: {}]   ;;  %s1746_s1 = inlined_call_operand.vmem [shape: f32[64,4], index: 1, kind: input, shape index: {}]   ;;  %s1747_s2 = inlined_call_operand.vmem [shape: f32[1,4], index: 2, kind: input, shape index: {}]   ;;  %s1748_s3 = inlined_call_operand.vmem [shape: f32[64,4], index: 3, kind: input, shape index: {}]   ;;  %s1749_s4 = inlined_call_operand.vmem [shape: f32[64,1], index: 4, kind: input, shape index: {}]   ;;  %s1750_s5 = inlined_call_operand.hbm [shape: f32[2,64,1024], index: 5, kind: output, shape index: {}]  }
   0x1   :  { %12 = vsyncpa [#allocation3 + $0x1], 0 }
   0x2   :  { %13 = vsyncpa [#allocation4], 0 }
   0x3   :  { %15 = vsyncpa [#allocation4 + $0x1], 0  ;;  %s1099_s18 = smov 0   ;;  %s1101_s19 = smov 0  }
   0x4   :  { %s1103_s20 = smov 0   ;;  %s1105_s21 = smov 0  }
   0x5 LB: > { %s1120_s22 = sadd.s32 4294967295, %s1060_s21   ;;  %s855_s23 = sadd.s32 4294967294, %s1060_s21   ;;  %s1060_s21 = sphi %s1105_s21, %s1823_s21   ;;  %s1056_s20 = sphi %s1103_s20, %s1822_s20   ;;  %s1052_s19 = sphi %s1101_s19, %s1821_s19   ;;  %s1048_s18 = sphi %s1099_s18, %s1820_s18  }
   0x6   : > { %s1124_s24 = sadd.s32 1, %s1060_s21   ;;  %s28_s25 = sadd.s32 1, %s1056_s20 }
   0x7   : > { %s25_s26 = ssub.s32 %s1060_s21, %s1124_s24  ;;  %p35_p0 = scmp.ne.s32.totalorder %s1056_s20, %s1052_s19 }
   0x8   : > { %p26_p1 = scmp.eq.s32.totalorder %s25_s26, 0  ;;  %p36_p2 = scmp.eq.s32.totalorder %s1060_s21, 0 }
   0x9   : > { %p41_p3 = scmp.ne.s32.totalorder %s1052_s19, %s1048_s18  ;;  %p42_p4 = scmp.eq.s32.totalorder %s1120_s22, 0 }
   0xa   : > { %s1136_s27 = scalar_select %p26_p1, %s1056_s20, %s28_s25  }
   0xb   : > { %p1138_p5 = por %p36_p2, %p35_p0  ;;  %p1142_p6 = por %p42_p4, %p41_p3 }
   0xc   : > { %p149_p7 = scmp.eq.s32.totalorder %s1120_s22, 1  ;;  %p155_p8 = scmp.eq.s32.totalorder %s855_s23, 1 }
   0xd   : > { %p891_p10 = scmp.lt.s32.totalorder %s1060_s21, 2  ;;  %s187_s7 = sand.u32 1, %s1056_s20  }
   0xe   : > { %p1149_p11 = por %p149_p7, %p35_p0  ;;  %p1153_p12 = por %p155_p8, %p41_p3 }
   0xf   : > { %s877_s8 = sshll.u32 %s1060_s21, 13  ;;  %s858_s9 = sshll.u32 %s187_s7, 9 }
  0x10   : > { %s1774_s30 = scalar_select %p1149_p11, 1, 0 }
  0x11   : > { %s1775_s6 = scalar_select %p1153_p12, 1, 0 }
  0x12   : > { %s1162_s12 = scalar_lea.hbm %s1745_s0, %s877_s8  ;;  %s191_s13 = scalar_lea.vmem [#allocation2], %s858_s9 }
  0x13   : > { %s198_s14 = sshll.u32 %s191_s13, 4  ;;  %p1166_p13 = pnand %p891_p10, %p1138_p5  ;;  %s1170_s14 = int_to_ptr.vmem [resolvable:$true] %s198_s14 }
  0x14   : > { %s1172_s16 = scalar_lea.sflag [#allocation3], %s187_s7  ;;  %s964_s17 = scalar_lea.hbm %s1162_s12, 8192 }
  0x15   : > { %p965_p0 = scmp.ne.s32.totalorder %s1162_s12, %s964_s17  ;;  %p966_p1 = pneg %p1166_p13 }
  0x16   : > { %s969_s26 = scalar_lea.hbm %s1745_s0, 16384  ;;  %p970_p4 = scmp.lt.u32.totalorder %s1162_s12, %s1745_s0 }
  0x17   : > { %p967_p2 = pnand %p966_p1, %p965_p0  ;;  %p971_p5 = scmp.lt.u32.totalorder %s969_s26, %s964_s17 }
  0x18   : > { %p973_p8 = scmp.lt.u32.totalorder %s964_s17, %s1162_s12 }
  0x19   : > { %p968_p3 = pneg %p967_p2  ;;  %p972_p7 = por %p971_p5, %p970_p4 }
  0x1b   : > { %p974_p10 = por %p973_p8, %p972_p7 }
  0x1d   : > { %p975_p9 = pnand %p974_p10, %p968_p3 }
  0x1f   : > { %978 = shalt.err (!%p975_p9)
}
  0x20   : > { %s979_s7 = scalar_lea.vmem %s1170_s14, 8192  ;;  %s1062_s9 = smov [#allocation2]  }
  0x21   : > { %p980_p0 = scmp.ne.s32.totalorder %s1170_s14, %s979_s7  ;;  %s984_s10 = sshll.u32 %s1062_s9, 4  ;;  %s985_s10 = int_to_ptr.vmem [resolvable:$false] %s984_s10 }
  0x22   : > { %s986_s11 = scalar_lea.vmem %s985_s10, 16384  ;;  %p987_p11 = scmp.lt.s32.totalorder %s1170_s14, %s985_s10 }
  0x23   : > { %p982_p2 = pnand %p980_p0, %p966_p1  ;;  %p988_p4 = scmp.lt.s32.totalorder %s986_s11, %s979_s7 }
  0x25   : > { %p983_p12 = pneg %p982_p2  ;;  %p989_p5 = por %p988_p4, %p987_p11 }
  0x27   : > { %p990_p7 = pnand %p989_p5, %p983_p12 }
  0x29   : > { %993 = shalt.err (!%p990_p7)
}
  0x2a   : > { %s1063_s13 = smov 1024   ;;  %s1064_s17 = smov 64  }
  0x2b   : > { %886 = dma.hbm_to_vmem [thread:$0]  (!%p1166_p13), %s1162_s12, 8192, %s1170_s14, %s1172_s16, %s1063_s13, %s1063_s13, %s1064_s17  }
  0x2c   : > { %p861_p9 = scmp.ge.s32.totalorder %s1060_s21, 1  ;;  %p206_p1 = scmp.lt.s32.totalorder %s1060_s21, 3 }
  0x2e   : > { %p207_p3 = pnand %p861_p9, %p206_p1 }
  0x30   : > { %210 = sbr.rel (%p207_p3) target bundleno = 616 (0x268), region = 40 }
  0x37   : > { %s1203_s23 = sand.u32 1, %s1052_s19  }
  0x38   : > { %s862_s25 = sshll.u32 %s1203_s23, 9  ;;  %s213_s26 = scalar_lea.sflag [#allocation3], %s1203_s23 }
  0x39   : > { %s1209_s28 = scalar_lea.vmem [#allocation2], %s862_s25 }
  0x3a   : > { %1039 = dma.done.wait (%p1142_p6), %s213_s26, 8192  }
  0x3b   : > { %1041 = vsyncadd (%p1142_p6), %s213_s26, 4294959104  ;;  %v1216_v0 = vld [vmem:[%s1209_s28] sm:$0xff]  ;;  %v1219_v1 = vld [vmem:[%s1209_s28 + $0x8] sm:$0xff]  ;;  %vm420_vm0 = vcmask 31744   ;;  %s1572_s10 = scalar_lea.vmem [#allocation5], %s862_s25  ;;  %s878_s25 = sshll.u32 %s1120_s22, 13 }
  0x3c   : > { %v1222_v2 = vld [vmem:[%s1209_s28 + $0x10] sm:$0xff]  ;;  %v307_v3 = vadd.f32 %v1219_v1, %v1216_v0  ;;  %v1227_v4 = vld [vmem:[%s1209_s28 + $0x18] sm:$0xff]  ;;  %v1230_v5 = vld [vmem:[%s1209_s28 + $0x80] sm:$0xff]  ;;  %s782_s11 = sshll.u32 %s1572_s10, 4  ;;  %s1691_s17 = scalar_lea.hbm %s1750_s5, %s878_s25  ;;  %s1693_s11 = int_to_ptr.vmem [resolvable:$true] %s782_s11 }
  0x3d   : > { %v1234_v7 = vld [vmem:[%s1209_s28 + $0x88] sm:$0xff]  ;;  %v1237_v8 = vld [vmem:[%s1209_s28 + $0x90] sm:$0xff]  ;;  %v1240_v9 = vld [vmem:[%s1209_s28 + $0x20] sm:$0xff]  ;;  %s769_s26 = scalar_lea.sflag [#allocation4], %s1203_s23  ;;  %p1817_p11 = scmp.ne.s32.totalorder %s1774_s30, 0 }
  0x3e   : > { %v308_v6 = vadd.f32 %v307_v3, %v1222_v2  ;;  %v325_v10 = vadd.f32 %v1234_v7, %v1230_v5  ;;  %v1246_v12 = vld [vmem:[%s1209_s28 + $0x98] sm:$0xff]  ;;  %v1249_v13 = vld [vmem:[%s1209_s28 + $0x40] sm:$0xff]  ;;  %v1252_v14 = vld [vmem:[%s1209_s28 + $0x48] sm:$0xff]  ;;  %s1066_s29 = smov [#allocation5]  }
  0x3f   : > { %v1255_v15 = vld [vmem:[%s1209_s28 + $0x28] sm:$0xff]  ;;  %v1259_v17 = vld [vmem:[%s1209_s28 + $0x50] sm:$0xff]  ;;  %v316_v18 = vadd.f32 %v1252_v14, %v1249_v13  ;;  %v1268_v21 = vld [vmem:[%s1209_s28 + $0xa0] sm:$0xff]  ;;  %s998_s12 = sshll.u32 %s1066_s29, 4  ;;  %s999_s12 = int_to_ptr.vmem [resolvable:$false] %s998_s12 }
  0x40   : > { %v309_v11 = vadd.f32 %v308_v6, %v1227_v4  ;;  %v326_v16 = vadd.f32 %v325_v10, %v1237_v8  ;;  %v1264_v19 = vld [vmem:[%s1209_s28 + $0x30] sm:$0xff]  ;;  %v1271_v22 = vld [vmem:[%s1209_s28 + $0x58] sm:$0xff]  ;;  %v1276_v25 = vld [vmem:[%s1209_s28 + $0xc0] sm:$0xff]  ;;  %s1000_s14 = scalar_lea.vmem %s999_s12, 16384  ;;  %p1001_p8 = scmp.lt.s32.totalorder %s1693_s11, %s999_s12 }
  0x41   : > { %v317_v24 = vadd.f32 %v316_v18, %v1259_v17  ;;  %v1279_v26 = vld [vmem:[%s1209_s28 + $0xc8] sm:$0xff]  ;;  %v1282_v27 = vld [vmem:[%s1209_s28 + $0xd0] sm:$0xff]  ;;  %v1285_v28 = vld [vmem:[%s1209_s28 + $0x38] sm:$0xff] }
  0x42   : > { %v310_v20 = vadd.f32 %v309_v11, %v1240_v9  ;;  %v327_v23 = vadd.f32 %v326_v16, %v1246_v12  ;;  %v1289_v30 = vld [vmem:[%s1209_s28 + $0xa8] sm:$0xff]  ;;  %v1292_v31 = vld [vmem:[%s1209_s28 + $0x60] sm:$0xff]  ;;  %v334_v32 = vadd.f32 %v1279_v26, %v1276_v25  ;;  %v1297_v33 = vld [vmem:[%s1209_s28 + $0xb0] sm:$0xff] }
  0x43   : > { %v318_v35 = vadd.f32 %v317_v24, %v1271_v22  ;;  %v1302_v36 = vld [vmem:[%s1209_s28 + $0xd8] sm:$0xff]  ;;  %v1305_v37 = vld [vmem:[%s1209_s28 + $0x100] sm:$0xff]  ;;  %v1309_v39 = vld [vmem:[%s1209_s28 + $0x68] sm:$0xff] }
  0x44   : > { %v311_v29 = vadd.f32 %v310_v20, %v1255_v15  ;;  %v328_v34 = vadd.f32 %v327_v23, %v1268_v21  ;;  %v335_v40 = vadd.f32 %v334_v32, %v1282_v27  ;;  %v1313_v41 = vld [vmem:[%s1209_s28 + $0x108] sm:$0xff]  ;;  %v1316_v42 = vld [vmem:[%s1209_s28 + $0x110] sm:$0xff]  ;;  %v1319_v43 = vld [vmem:[%s1209_s28 + $0xb8] sm:$0xff] }
  0x45   : > { %v1323_v45 = vld [vmem:[%s1209_s28 + $0x70] sm:$0xff]  ;;  %v319_v46 = vadd.f32 %v318_v35, %v1292_v31  ;;  %v1327_v47 = vld [vmem:[%s1209_s28 + $0xe0] sm:$0xff]  ;;  %v343_v48 = vadd.f32 %v1313_v41, %v1305_v37  ;;  %v1334_v51 = vld [vmem:[%s1209_s28 + $0x118] sm:$0xff] }
  0x46   : > { %v312_v38 = vadd.f32 %v311_v29, %v1264_v19  ;;  %v329_v44 = vadd.f32 %v328_v34, %v1289_v30  ;;  %v336_v50 = vadd.f32 %v335_v40, %v1302_v36  ;;  %v1337_v52 = vld [vmem:[%s1209_s28 + $0x140] sm:$0xff]  ;;  %v1340_v53 = vld [vmem:[%s1209_s28 + $0x148] sm:$0xff]  ;;  %v1344_v55 = vld [vmem:[%s1209_s28 + $0x78] sm:$0xff] }
  0x47   : > { %v320_v56 = vadd.f32 %v319_v46, %v1309_v39  ;;  %v1348_v57 = vld [vmem:[%s1209_s28 + $0xe8] sm:$0xff]  ;;  %v344_v58 = vadd.f32 %v343_v48, %v1316_v42  ;;  %v1352_v59 = vld [vmem:[%s1209_s28 + $0x150] sm:$0xff]  ;;  %v352_v60 = vadd.f32 %v1340_v53, %v1337_v52  ;;  %v1361_v63 = vld [vmem:[%s1209_s28 + $0x120] sm:$0xff] }
  0x48   : > { %v313_v49 = vadd.f32 %v312_v38, %v1285_v28  ;;  %v330_v54 = vadd.f32 %v329_v44, %v1297_v33  ;;  %v1357_v61 = vld [vmem:[%s1209_s28 + $0xf0] sm:$0xff]  ;;  %v337_v62 = vadd.f32 %v336_v50, %v1327_v47  ;;  %v1364_v3 = vld [vmem:[%s1209_s28 + $0x158] sm:$0xff]  ;;  %v1371_v18 = vld [vmem:[%s1209_s28 + $0x180] sm:$0xff] }
  0x49   : > { %v321_v10 = vadd.f32 %v320_v56, %v1323_v45  ;;  %v345_v11 = vadd.f32 %v344_v58, %v1334_v51  ;;  %v353_v16 = vadd.f32 %v352_v60, %v1352_v59  ;;  %1777 = vst [vmem:[#allocation8_spill] sm:$0xff] %v1371_v18  ;;  %v1374_v20 = vld [vmem:[%s1209_s28 + $0x188] sm:$0xff]  ;;  %v1377_v23 = vld [vmem:[%s1209_s28 + $0x190] sm:$0xff]  ;;  %v1380_v24 = vld [vmem:[%s1209_s28 + $0xf8] sm:$0xff] }
  0x4a   : > { %314 = vadd.xlane.f32.xlu0 %v313_v49  ;;  %v331_v6 = vadd.f32 %v330_v54, %v1319_v43  ;;  %1778 = vst [vmem:[#allocation9_spill] sm:$0xff] %v1374_v20  ;;  %1779 = vst [vmem:[#allocation10_spill] sm:$0xff] %v1377_v23  ;;  %v338_v29 = vadd.f32 %v337_v62, %v1348_v57  ;;  %v1384_v32 = vld [vmem:[%s1209_s28 + $0x128] sm:$0xff]  ;;  %v1387_v34 = vld [vmem:[%s1209_s28 + $0x160] sm:$0xff]  ;;  %v361_v35 = vadd.f32 %v1374_v20, %v1371_v18 }
  0x4b   : > { %1780 = vst [vmem:[#allocation11_spill] sm:$0xff] %v1387_v34  ;;  %v322_v38 = vadd.f32 %v321_v10, %v1344_v55  ;;  %v1393_v40 = vld [vmem:[%s1209_s28 + $0x130] sm:$0xff]  ;;  %v346_v44 = vadd.f32 %v345_v11, %v1361_v63  ;;  %v354_v46 = vadd.f32 %v353_v16, %v1364_v3  ;;  %v1398_v48 = vld [vmem:[%s1209_s28 + $0x198] sm:$0xff]  ;;  %v1401_v49 = vld [vmem:[%s1209_s28 + $0x1c0] sm:$0xff] }
  0x4c   : > { %332 = vadd.xlane.f32.xlu1 %v331_v6  ;;  %1781 = vst [vmem:[#allocation12_spill] sm:$0xff] %v1398_v48  ;;  %1782 = vst [vmem:[#allocation13_spill] sm:$0xff] %v1401_v49  ;;  %v339_v50 = vadd.f32 %v338_v29, %v1357_v61  ;;  %v1405_v54 = vld [vmem:[%s1209_s28 + $0x168] sm:$0xff]  ;;  %v362_v56 = vadd.f32 %v361_v35, %v1377_v23  ;;  %v1412_v60 = vld [vmem:[%s1209_s28 + $0x1d0] sm:$0xff] }
  0x4d   : > { %1783 = vst [vmem:[#allocation14_spill] sm:$0xff] %v1405_v54  ;;  %v1409_v58 = vld [vmem:[%s1209_s28 + $0x1c8] sm:$0xff]  ;;  %1785 = vst [vmem:[#allocation16_spill] sm:$0xff] %v1412_v60  ;;  %v347_v62 = vadd.f32 %v346_v44, %v1384_v32  ;;  %v355_v6 = vadd.f32 %v354_v46, %v1387_v34  ;;  %v1417_v10 = vld [vmem:[%s1209_s28 + $0x1a0] sm:$0xff] }
  0x4e   : > { %1784 = vst [vmem:[#allocation15_spill] sm:$0xff] %v1409_v58  ;;  %323 = vadd.xlane.f32.xlu0 %v322_v38  ;;  %1786 = vst [vmem:[#allocation17_spill] sm:$0xff] %v1417_v10  ;;  %v370_v11 = vadd.f32 %v1409_v58, %v1401_v49  ;;  %v340_v16 = vadd.f32 %v339_v50, %v1380_v24  ;;  %v1423_v29 = vld [vmem:[%s1209_s28 + $0x138] sm:$0xff]  ;;  %v1426_v35 = vld [vmem:[%s1209_s28 + $0x170] sm:$0xff]  ;;  %v363_v38 = vadd.f32 %v362_v56, %v1398_v48 }
  0x4f   : > { %1787 = vst [vmem:[#allocation18_spill] sm:$0xff] %v1426_v35  ;;  %v1430_v23 = vld [vmem:[%s1209_s28 + $0x1d8] sm:$0xff]  ;;  %v348_v44 = vadd.f32 %v347_v62, %v1393_v40  ;;  %v356_v46 = vadd.f32 %v355_v6, %v1405_v54  ;;  %v1435_v20 = vld [vmem:[%s1209_s28 + $0x1a8] sm:$0xff]  ;;  %v1443_v18 = vld [vmem:[%s1209_s28 + $0x1e0] sm:$0xff] }
  0x50   : > { %1788 = vst [vmem:[#allocation19_spill] sm:$0xff] %v1430_v23  ;;  %1789 = vst [vmem:[#allocation20_spill] sm:$0xff] %v1435_v20  ;;  %v371_v58 = vadd.f32 %v370_v11, %v1412_v60  ;;  %341 = vadd.xlane.f32.xlu1 %v340_v16  ;;  %v1439_v50 = vld [vmem:[%s1209_s28 + $0x178] sm:$0xff]  ;;  %v364_v49 = vadd.f32 %v363_v38, %v1417_v10  ;;  %v1448_v48 = vld [vmem:[%s1209_s28 + $0x1b0] sm:$0xff] }
  0x51   : > { %1790 = vst [vmem:[#allocation21_spill] sm:$0xff] %v1439_v50  ;;  %1791 = vst [vmem:[#allocation22_spill] sm:$0xff] %v1443_v18  ;;  %v349_v56 = vadd.f32 %v348_v44, %v1423_v29  ;;  %v357_v62 = vadd.f32 %v356_v46, %v1426_v35  ;;  %v1453_v11 = vld [vmem:[%s1209_s28 + $0x1e8] sm:$0xff]  ;;  %v1457_v60 = vld [vmem:[%s1209_s28 + $0x1b8] sm:$0xff] }
  0x52   : > { %1792 = vst [vmem:[#allocation23_spill] sm:$0xff] %v1448_v48  ;;  %v372_v6 = vadd.f32 %v371_v58, %v1430_v23  ;;  %v365_v54 = vadd.f32 %v364_v49, %v1435_v20  ;;  %1793 = vst [vmem:[#allocation24_spill] sm:$0xff] %v1453_v11  ;;  %v1462_v44 = vld [vmem:[%s1209_s28 + $0x1f0] sm:$0xff]  ;;  %v1467_v23 = vld [vmem:[%s1209_s28 + $0x1f8] sm:$0xff]  ;;  %s994_s28 = scalar_lea.vmem %s1693_s11, 8192 }
  0x53   : > { %350 = vadd.xlane.f32.xlu0 %v349_v56  ;;  %v358_v16 = vadd.f32 %v357_v62, %v1439_v50  ;;  %1794 = vst [vmem:[#allocation25_spill] sm:$0xff] %v1457_v60  ;;  %1795 = vst [vmem:[#allocation26_spill] sm:$0xff] %v1462_v44  ;;  %p995_p6 = scmp.ne.s32.totalorder %s1693_s11, %s994_s28  ;;  %p1002_p10 = scmp.lt.s32.totalorder %s1000_s14, %s994_s28 }
  0x54   : > { %v373_v38 = vadd.f32 %v372_v6, %v1443_v18  ;;  %v366_v10 = vadd.f32 %v365_v54, %v1448_v48  ;;  %1796 = vst [vmem:[#allocation27_spill] sm:$0xff] %v1467_v23  ;;  %v387_v54 = vld [vmem:[%s1746_s1] sm:$0xff] }
  0x55   : > { %359 = vadd.xlane.f32.xlu1 %v358_v16  ;;  %p996_p12 = pnand %p995_p6, %p1817_p11  ;;  %p1003_p0 = por %p1002_p10, %p1001_p8 }
  0x56   : > { %v374_v46 = vadd.f32 %v373_v38, %v1453_v11  ;;  %v367_v58 = vadd.f32 %v366_v10, %v1457_v60  ;;  %v389_v10 = vld [vmem:[%s1746_s1 + $0x10] sm:$0xff]  ;;  %v388_v38 = vld [vmem:[%s1746_s1 + $0x8] sm:$0xff] }
  0x57   : > { %p997_p13 = pneg %p996_p12 }
  0x58   : > { %v375_v49 = vadd.f32 %v374_v46, %v1462_v44  ;;  %368 = vadd.xlane.f32.xlu0 %v367_v58 }
  0x59   : > { %p1004_p2 = pnand %p1003_p0, %p997_p13 }
  0x5a   : > { %v376_v56 = vadd.f32 %v375_v49, %v1467_v23  ;;  %v390_v23 = vld [vmem:[%s1746_s1 + $0x18] sm:$0xff] }
  0x5c   : > { %377 = vadd.xlane.f32.xlu1 %v376_v56 }
  0xd7   : > { %v315_v62 = vpop.xlane.xlu0 %314 }
  0xd8   : > { %v379_v20 = vmul.f32 0.0009765625, %v315_v62 }
  0xd9   : > { %v333_v6 = vpop.xlane.xlu1 %332 }
  0xda   : > { %v381_v16 = vmul.f32 0.0009765625, %v333_v6  ;;  %v412_v58 = vmul.f32 %v387_v54, %v379_v20  ;;  %v391_v20 = vld [vmem:[%s1746_s1 + $0x20] sm:$0xff] }
  0xdb   : > { %v324_v46 = vpop.xlane.xlu0 %323 }
  0xdc   : > { %v380_v49 = vmul.f32 0.0009765625, %v324_v46  ;;  %v414_v56 = vmul.f32 %v389_v10, %v381_v16  ;;  %v421_v11 = vsel %vm420_vm0, %v412_v58, 0.0 }
  0xdd   : > { %v342_v44 = vpop.xlane.xlu1 %341 }
  0xde   : > { %v413_v62 = vmul.f32 %v388_v38, %v380_v49  ;;  %v382_v6 = vmul.f32 0.0009765625, %v342_v44  ;;  %v424_v16 = vsel %vm420_vm0, %v414_v56, 0.0  ;;  %v392_v44 = vld [vmem:[%s1746_s1 + $0x28] sm:$0xff] }
  0xe0   : > { %v422_v18 = vsel %vm420_vm0, %v413_v62, 0.0  ;;  %v415_v48 = vmul.f32 %v390_v23, %v382_v6  ;;  %v351_v54 = vpop.xlane.xlu0 %350  ;;  %v393_v6 = vld [vmem:[%s1746_s1 + $0x30] sm:$0xff] }
  0xe1   : > { %v423_v60 = vadd.f32 %v422_v18, %v421_v11  ;;  %v383_v10 = vmul.f32 0.0009765625, %v351_v54 }
  0xe2   : > { %v426_v46 = vsel %vm420_vm0, %v415_v48, 0.0  ;;  %v360_v58 = vpop.xlane.xlu1 %359 }
  0xe3   : > { %v425_v38 = vadd.f32 %v424_v16, %v423_v60  ;;  %v416_v49 = vmul.f32 %v391_v20, %v383_v10  ;;  %v384_v62 = vmul.f32 0.0009765625, %v360_v58  ;;  %v394_v20 = vld [vmem:[%s1746_s1 + $0x38] sm:$0xff] }
  0xe5   : > { %v427_v18 = vadd.f32 %v426_v46, %v425_v38  ;;  %v428_v23 = vsel %vm420_vm0, %v416_v49, 0.0  ;;  %v417_v11 = vmul.f32 %v392_v44, %v384_v62  ;;  %v369_v56 = vpop.xlane.xlu0 %368 }
  0xe6   : > { %v385_v60 = vmul.f32 0.0009765625, %v369_v56 }
  0xe7   : > { %v429_v54 = vadd.f32 %v428_v23, %v427_v18  ;;  %v430_v48 = vsel %vm420_vm0, %v417_v11, 0.0  ;;  %v444_v23 = vlaneseq }
  0xe8   : > { %v418_v50 = vmul.f32 %v393_v6, %v385_v60  ;;  %v395_v60 = vld [vmem:[%s1747_s2] sm:$0x1] }
  0xe9   : > { %v431_v16 = vadd.f32 %v430_v48, %v429_v54  ;;  %v378_v10 = vpop.xlane.xlu1 %377  ;;  %v445_v54 = vshrl.u32 %v444_v23, 7  ;;  %v401_v23 = vld [vmem:[%s1748_s3 + $0x28] sm:$0xff] }
  0xea   : > { %v386_v38 = vmul.f32 0.0009765625, %v378_v10  ;;  %v432_v46 = vsel %vm420_vm0, %v418_v50, 0.0 }
  0xeb   : > { %v433_v44 = vadd.f32 %v432_v46, %v431_v16  ;;  %v446_v10 = vsub.s32 0, %v445_v54  ;;  %v397_v16 = vld [vmem:[%s1748_s3 + $0x8] sm:$0xff]  ;;  %v398_v46 = vld [vmem:[%s1748_s3 + $0x10] sm:$0xff] }
  0xec   : > { %v419_v58 = vmul.f32 %v394_v20, %v386_v38  ;;  %v399_v38 = vld [vmem:[%s1748_s3 + $0x18] sm:$0xff] }
  0xee   : > { %v434_v49 = vsel %vm420_vm0, %v419_v58, 0.0 }
  0xef   : > { %v435_v62 = vadd.f32 %v434_v49, %v433_v44 }
  0xf1   : > { %v436_v35 = vrot.slane %v435_v62, 4 }
  0xf3   : > { %v437_v18 = vadd.f32 %v436_v35, %v435_v62  ;;  %v396_v35 = vld [vmem:[%s1748_s3] sm:$0xff] }
  0xf5   : > { %v438_v56 = vrot.slane %v437_v18, 2 }
  0xf7   : > { %v439_v11 = vadd.f32 %v438_v56, %v437_v18  ;;  %v400_v56 = vld [vmem:[%s1748_s3 + $0x20] sm:$0xff] }
  0xf9   : > { %v440_v6 = vrot.slane %v439_v11, 1 }
  0xfb   : > { %v441_v48 = vadd.f32 %v440_v6, %v439_v11 }
  0xfd   : > { %v442_v34 = vadd.f32 %v441_v48, %v395_v60  ;;  %v403_v48 = vld [vmem:[%s1748_s3 + $0x38] sm:$0xff] }
  0xff   : > { %v443_v50 = vmax.f32 %v442_v34, 0.0 }
 0x101   : > { %v447_v20 = vrot.slane %v443_v50, %v446_v10  ;;  %v402_v10 = vld [vmem:[%s1748_s3 + $0x30] sm:$0xff] }
 0x103   : > { %v449_v44 = vmul.f32 %v447_v20, %v397_v16  ;;  %v448_v58 = vmul.f32 %v447_v20, %v396_v35  ;;  %v451_v62 = vmul.f32 %v447_v20, %v399_v38  ;;  %v450_v18 = vmul.f32 %v447_v20, %v398_v46 }
 0x104   : > { %v453_v6 = vmul.f32 %v447_v20, %v401_v23  ;;  %v452_v60 = vmul.f32 %v447_v20, %v400_v56  ;;  %v455_v35 = vmul.f32 %v447_v20, %v403_v48  ;;  %v454_v38 = vmul.f32 %v447_v20, %v402_v10  ;;  %v407_v56 = vld [vmem:[%s1749_s4 + $0x18] sm:$0xff] }
 0x105   : > { %v459_v34 = vsel %vm420_vm0, %v449_v44, 0.0  ;;  %v456_v49 = vsel %vm420_vm0, %v448_v58, 0.0  ;;  %v465_v11 = vsel %vm420_vm0, %v451_v62, 0.0  ;;  %v462_v54 = vsel %vm420_vm0, %v450_v18, 0.0 }
 0x106   : > { %460 = vadd.xlane.f32.xlu1 %v459_v34  ;;  %457 = vadd.xlane.f32.xlu0 %v456_v49  ;;  %v471_v50 = vsel %vm420_vm0, %v453_v6, 0.0  ;;  %v468_v16 = vsel %vm420_vm0, %v452_v60, 0.0  ;;  %v477_v46 = vsel %vm420_vm0, %v455_v35, 0.0  ;;  %v474_v44 = vsel %vm420_vm0, %v454_v38, 0.0  ;;  %v405_v34 = vld [vmem:[%s1749_s4 + $0x8] sm:$0xff]  ;;  %v404_v49 = vld [vmem:[%s1749_s4] sm:$0xff] }
 0x107   : > { %v1065_v58 = vmov 0   ;;  %v408_v35 = vld [vmem:[%s1749_s4 + $0x20] sm:$0xff] }
 0x108   : > { %931 = vset.pattern.permute.xlu1 %v1065_v58  ;;  %930 = vset.pattern.permute.xlu0 %v1065_v58 }
 0x10a   : > { %466 = vadd.xlane.f32.xlu1 %v465_v11  ;;  %463 = vadd.xlane.f32.xlu0 %v462_v54  ;;  %v406_v11 = vld [vmem:[%s1749_s4 + $0x10] sm:$0xff] }
 0x10e   : > { %472 = vadd.xlane.f32.xlu1 %v471_v50  ;;  %469 = vadd.xlane.f32.xlu0 %v468_v16  ;;  %v409_v16 = vld [vmem:[%s1749_s4 + $0x28] sm:$0xff] }
 0x112   : > { %478 = vadd.xlane.f32.xlu1 %v477_v46  ;;  %475 = vadd.xlane.f32.xlu0 %v474_v44 }
 0x193   : > { %v461_v20 = vpop.xlane.xlu1 %460  ;;  %v458_v62 = vpop.xlane.xlu0 %457 }
 0x194   : > { %v481_v18 = vadd.f32 %v461_v20, %v405_v34  ;;  %v480_v23 = vadd.f32 %v458_v62, %v404_v49  ;;  %v410_v62 = vld [vmem:[%s1749_s4 + $0x30] sm:$0xff] }
 0x196   : > { %v865_v54 = vmul.f32 -1.442695, %v481_v18  ;;  %v864_v6 = vmul.f32 -1.442695, %v480_v23 }
 0x197   : > { %v467_v60 = vpop.xlane.xlu1 %466  ;;  %v464_v48 = vpop.xlane.xlu0 %463 }
 0x198   : > { %932 = vpow2.f32 %v865_v54  ;;  %v483_v10 = vadd.f32 %v467_v60, %v407_v56  ;;  %v482_v50 = vadd.f32 %v464_v48, %v406_v11  ;;  %v411_v54 = vld [vmem:[%s1749_s4 + $0x38] sm:$0xff] }
 0x199   : > { %934 = vpow2.f32 %v864_v6 }
 0x19a   : > { %v867_v38 = vmul.f32 -1.442695, %v483_v10  ;;  %v866_v46 = vmul.f32 -1.442695, %v482_v50 }
 0x19b   : > { %v473_v44 = vpop.xlane.xlu1 %472  ;;  %v470_v58 = vpop.xlane.xlu0 %469 }
 0x19c   : > { %936 = vpow2.f32 %v867_v38  ;;  %v485_v34 = vadd.f32 %v473_v44, %v409_v16  ;;  %v484_v49 = vadd.f32 %v470_v58, %v408_v35 }
 0x19d   : > { %938 = vpow2.f32 %v866_v46 }
 0x19e   : > { %v868_v20 = vmul.f32 -1.442695, %v484_v49  ;;  %v869_v23 = vmul.f32 -1.442695, %v485_v34 }
 0x19f   : > { %v476_v18 = vpop.xlane.xlu0 %475  ;;  %v479_v6 = vpop.xlane.xlu1 %478 }
 0x1a0   : > { %940 = vpow2.f32 %v868_v20  ;;  %v486_v56 = vadd.f32 %v476_v18, %v410_v62  ;;  %v487_v50 = vadd.f32 %v479_v6, %v411_v54 }
 0x1a1   : > { %942 = vpow2.f32 %v869_v23 }
 0x1a2   : > { %v933_v11 = vpop.eup %932  ;;  %v870_v16 = vmul.f32 -1.442695, %v486_v56  ;;  %v871_v44 = vmul.f32 -1.442695, %v487_v50 }
 0x1a3   : > { %v935_v60 = vpop.eup %934  ;;  %v513_v48 = vadd.f32 1.0, %v933_v11 }
 0x1a4   : > { %v512_v10 = vadd.f32 1.0, %v935_v60 }
 0x1a5   : > { %944 = vrcp.f32 %v513_v48 }
 0x1a6   : > { %v937_v35 = vpop.eup %936  ;;  %946 = vrcp.f32 %v512_v10 }
 0x1a7   : > { %v939_v38 = vpop.eup %938  ;;  %948 = vpow2.f32 %v870_v16  ;;  %v515_v58 = vadd.f32 1.0, %v937_v35 }
 0x1a8   : > { %v514_v46 = vadd.f32 1.0, %v939_v38 }
 0x1aa   : > { %950 = vrcp.f32 %v514_v46  ;;  %v941_v34 = vpop.eup %940 }
 0x1ab   : > { %952 = vpow2.f32 %v871_v44  ;;  %v943_v49 = vpop.eup %942  ;;  %v516_v20 = vadd.f32 1.0, %v941_v34 }
 0x1ac   : > { %954 = vrcp.f32 %v515_v58  ;;  %v517_v23 = vadd.f32 1.0, %v943_v49 }
 0x1ad   : > { %956 = vrcp.f32 %v516_v20 }
 0x1ae   : > { %958 = vrcp.f32 %v517_v23 }
 0x1af   : > { %v945_v62 = vpop.eup %944 }
 0x1b0   : > { %v947_v18 = vpop.eup %946  ;;  %543 = vperm.xlu1 %931, %v945_v62  }
 0x1b1   : > { %538 = vperm.xlu0 %930, %v947_v18   ;;  %v949_v56 = vpop.eup %948 }
 0x1b2   : > { %v518_v54 = vadd.f32 1.0, %v949_v56 }
 0x1b4   : > { %v951_v11 = vpop.eup %950  ;;  %960 = vrcp.f32 %v518_v54 }
 0x1b5   : > { %548 = vperm.xlu1 %931, %v951_v11   ;;  %v953_v6 = vpop.eup %952 }
 0x1b6   : > { %v955_v60 = vpop.eup %954  ;;  %v519_v48 = vadd.f32 1.0, %v953_v6 }
 0x1b7   : > { %v957_v10 = vpop.eup %956 }
 0x1b8   : > { %962 = vrcp.f32 %v519_v48  ;;  %v959_v50 = vpop.eup %958 }
 0x1b9   : > { %553 = vperm.xlu1 %931, %v955_v60  }
 0x1bd   : > { %558 = vperm.xlu1 %931, %v957_v10  }
 0x1be   : > { %v961_v16 = vpop.eup %960 }
 0x1c1   : > { %563 = vperm.xlu1 %931, %v959_v50  }
 0x1c2   : > { %v963_v35 = vpop.eup %962 }
 0x1c5   : > { %568 = vperm.xlu1 %931, %v961_v16  }
 0x1c9   : > { %573 = vperm.xlu1 %931, %v963_v35  }
 0x22f   : > { %v544_v38 = vpop.permute.xlu1 %543 }
 0x230   : > { %v584_v46 = vmul.f32 %v544_v38, %v1249_v13  ;;  %v585_v44 = vmul.f32 %v544_v38, %v1252_v14  ;;  %v586_v58 = vmul.f32 %v544_v38, %v1259_v17  ;;  %v587_v34 = vmul.f32 %v544_v38, %v1271_v22  ;;  %v539_v23 = vpop.permute.xlu0 %538 }
 0x231   : > { %v588_v49 = vmul.f32 %v544_v38, %v1292_v31  ;;  %v589_v20 = vmul.f32 %v544_v38, %v1309_v39  ;;  %v590_v62 = vmul.f32 %v544_v38, %v1323_v45  ;;  %v591_v18 = vmul.f32 %v544_v38, %v1344_v55 }
 0x232   : > { %v648_v56 = vadd.f32 %v584_v46, %v544_v38  ;;  %v649_v11 = vadd.f32 %v585_v44, %v544_v38  ;;  %v650_v54 = vadd.f32 %v586_v58, %v544_v38  ;;  %v651_v13 = vadd.f32 %v587_v34, %v544_v38 }
 0x233   : > { %v652_v6 = vadd.f32 %v588_v49, %v544_v38  ;;  %v653_v14 = vadd.f32 %v589_v20, %v544_v38  ;;  %v654_v60 = vadd.f32 %v590_v62, %v544_v38  ;;  %v655_v48 = vadd.f32 %v591_v18, %v544_v38 }
 0x234   : > { %712 = vst [vmem:[%s1572_s10 + $0x40] sm:$0xff] %v648_v56  ;;  %713 = vst [vmem:[%s1572_s10 + $0x48] sm:$0xff] %v649_v11  ;;  %v576_v17 = vmul.f32 %v539_v23, %v1216_v0  ;;  %v577_v22 = vmul.f32 %v539_v23, %v1219_v1  ;;  %v578_v31 = vmul.f32 %v539_v23, %v1222_v2  ;;  %v549_v45 = vpop.permute.xlu1 %548 }
 0x235   : > { %714 = vst [vmem:[%s1572_s10 + $0x50] sm:$0xff] %v650_v54  ;;  %715 = vst [vmem:[%s1572_s10 + $0x58] sm:$0xff] %v651_v13  ;;  %v579_v39 = vmul.f32 %v539_v23, %v1227_v4  ;;  %v580_v55 = vmul.f32 %v539_v23, %v1240_v9  ;;  %v581_v10 = vmul.f32 %v539_v23, %v1255_v15 }
 0x236   : > { %716 = vst [vmem:[%s1572_s10 + $0x60] sm:$0xff] %v652_v6  ;;  %717 = vst [vmem:[%s1572_s10 + $0x68] sm:$0xff] %v653_v14  ;;  %v582_v0 = vmul.f32 %v539_v23, %v1264_v19  ;;  %v583_v1 = vmul.f32 %v539_v23, %v1285_v28  ;;  %v640_v2 = vadd.f32 %v576_v17, %v539_v23 }
 0x237   : > { %718 = vst [vmem:[%s1572_s10 + $0x70] sm:$0xff] %v654_v60  ;;  %719 = vst [vmem:[%s1572_s10 + $0x78] sm:$0xff] %v655_v48  ;;  %v641_v50 = vadd.f32 %v577_v22, %v539_v23  ;;  %v642_v4 = vadd.f32 %v578_v31, %v539_v23  ;;  %v643_v16 = vadd.f32 %v579_v39, %v539_v23 }
 0x238   : > { %v644_v35 = vadd.f32 %v580_v55, %v539_v23  ;;  %v645_v38 = vadd.f32 %v581_v10, %v539_v23  ;;  %v646_v46 = vadd.f32 %v582_v0, %v539_v23  ;;  %v647_v44 = vadd.f32 %v583_v1, %v539_v23  ;;  %704 = vst [vmem:[%s1572_s10] sm:$0xff] %v640_v2  ;;  %v554_v58 = vpop.permute.xlu1 %553 }
 0x239   : > { %705 = vst [vmem:[%s1572_s10 + $0x8] sm:$0xff] %v641_v50  ;;  %706 = vst [vmem:[%s1572_s10 + $0x10] sm:$0xff] %v642_v4  ;;  %v592_v9 = vmul.f32 %v549_v45, %v1230_v5  ;;  %v593_v15 = vmul.f32 %v549_v45, %v1234_v7  ;;  %v594_v19 = vmul.f32 %v549_v45, %v1237_v8 }
 0x23a   : > { %707 = vst [vmem:[%s1572_s10 + $0x18] sm:$0xff] %v643_v16  ;;  %v595_v28 = vmul.f32 %v549_v45, %v1246_v12  ;;  %708 = vst [vmem:[%s1572_s10 + $0x20] sm:$0xff] %v644_v35  ;;  %v596_v34 = vmul.f32 %v549_v45, %v1268_v21  ;;  %v597_v49 = vmul.f32 %v549_v45, %v1289_v30  ;;  %v1797_v35 = vld [vmem:[#allocation11_spill] sm:$0xff] }
 0x23b   : > { %709 = vst [vmem:[%s1572_s10 + $0x28] sm:$0xff] %v645_v38  ;;  %710 = vst [vmem:[%s1572_s10 + $0x30] sm:$0xff] %v646_v46  ;;  %v598_v5 = vmul.f32 %v549_v45, %v1297_v33  ;;  %v599_v7 = vmul.f32 %v549_v45, %v1319_v43  ;;  %v656_v8 = vadd.f32 %v592_v9, %v549_v45  ;;  %v1798_v46 = vld [vmem:[#allocation14_spill] sm:$0xff] }
 0x23c   : > { %711 = vst [vmem:[%s1572_s10 + $0x38] sm:$0xff] %v647_v44  ;;  %v657_v20 = vadd.f32 %v593_v15, %v549_v45  ;;  %v658_v12 = vadd.f32 %v594_v19, %v549_v45  ;;  %v659_v62 = vadd.f32 %v595_v28, %v549_v45  ;;  %v660_v18 = vadd.f32 %v596_v34, %v549_v45  ;;  %v559_v54 = vpop.permute.xlu1 %558 }
 0x23d   : > { %v661_v23 = vadd.f32 %v597_v49, %v549_v45  ;;  %v662_v56 = vadd.f32 %v598_v5, %v549_v45  ;;  %v663_v11 = vadd.f32 %v599_v7, %v549_v45  ;;  %720 = vst [vmem:[%s1572_s10 + $0x80] sm:$0xff] %v656_v8  ;;  %v600_v21 = vmul.f32 %v554_v58, %v1276_v25  ;;  %v1801_v7 = vld [vmem:[#allocation8_spill] sm:$0xff] }
 0x23e   : > { %721 = vst [vmem:[%s1572_s10 + $0x88] sm:$0xff] %v657_v20  ;;  %722 = vst [vmem:[%s1572_s10 + $0x90] sm:$0xff] %v658_v12  ;;  %v601_v30 = vmul.f32 %v554_v58, %v1279_v26  ;;  %v602_v33 = vmul.f32 %v554_v58, %v1282_v27  ;;  %v603_v43 = vmul.f32 %v554_v58, %v1302_v36  ;;  %v1802_v20 = vld [vmem:[#allocation9_spill] sm:$0xff] }
 0x23f   : > { %723 = vst [vmem:[%s1572_s10 + $0x98] sm:$0xff] %v659_v62  ;;  %724 = vst [vmem:[%s1572_s10 + $0xa0] sm:$0xff] %v660_v18  ;;  %v604_v13 = vmul.f32 %v554_v58, %v1327_v47  ;;  %v605_v6 = vmul.f32 %v554_v58, %v1348_v57  ;;  %v606_v25 = vmul.f32 %v554_v58, %v1357_v61  ;;  %v1803_v62 = vld [vmem:[#allocation10_spill] sm:$0xff] }
 0x240   : > { %725 = vst [vmem:[%s1572_s10 + $0xa8] sm:$0xff] %v661_v23  ;;  %726 = vst [vmem:[%s1572_s10 + $0xb0] sm:$0xff] %v662_v56  ;;  %v607_v26 = vmul.f32 %v554_v58, %v1380_v24  ;;  %v664_v27 = vadd.f32 %v600_v21, %v554_v58  ;;  %v665_v14 = vadd.f32 %v601_v30, %v554_v58  ;;  %v564_v39 = vpop.permute.xlu1 %563  ;;  %v1804_v23 = vld [vmem:[#allocation12_spill] sm:$0xff] }
 0x241   : > { %727 = vst [vmem:[%s1572_s10 + $0xb8] sm:$0xff] %v663_v11  ;;  %v666_v36 = vadd.f32 %v602_v33, %v554_v58  ;;  %v667_v60 = vadd.f32 %v603_v43, %v554_v58  ;;  %v668_v48 = vadd.f32 %v604_v13, %v554_v58  ;;  %v669_v17 = vadd.f32 %v605_v6, %v554_v58  ;;  %v1805_v11 = vld [vmem:[#allocation17_spill] sm:$0xff]  ;;  %v1806_v30 = vld [vmem:[#allocation20_spill] sm:$0xff]  ;;  %v1807_v43 = vld [vmem:[#allocation23_spill] sm:$0xff] }
 0x242   : > { %v670_v22 = vadd.f32 %v606_v25, %v554_v58  ;;  %v671_v31 = vadd.f32 %v607_v26, %v554_v58  ;;  %728 = vst [vmem:[%s1572_s10 + $0xc0] sm:$0xff] %v664_v27  ;;  %729 = vst [vmem:[%s1572_s10 + $0xc8] sm:$0xff] %v665_v14  ;;  %v608_v47 = vmul.f32 %v559_v54, %v1305_v37  ;;  %v1808_v13 = vld [vmem:[#allocation25_spill] sm:$0xff] }
 0x243   : > { %730 = vst [vmem:[%s1572_s10 + $0xd0] sm:$0xff] %v666_v36  ;;  %731 = vst [vmem:[%s1572_s10 + $0xd8] sm:$0xff] %v667_v60  ;;  %v609_v57 = vmul.f32 %v559_v54, %v1313_v41  ;;  %v610_v61 = vmul.f32 %v559_v54, %v1316_v42  ;;  %v611_v24 = vmul.f32 %v559_v54, %v1334_v51 }
 0x244   : > { %732 = vst [vmem:[%s1572_s10 + $0xe0] sm:$0xff] %v668_v48  ;;  %733 = vst [vmem:[%s1572_s10 + $0xe8] sm:$0xff] %v669_v17  ;;  %v612_v45 = vmul.f32 %v559_v54, %v1361_v63  ;;  %v613_v55 = vmul.f32 %v559_v54, %v1384_v32  ;;  %v614_v37 = vmul.f32 %v559_v54, %v1393_v40  ;;  %v569_v16 = vpop.permute.xlu1 %568 }
 0x245   : > { %734 = vst [vmem:[%s1572_s10 + $0xf0] sm:$0xff] %v670_v22  ;;  %735 = vst [vmem:[%s1572_s10 + $0xf8] sm:$0xff] %v671_v31  ;;  %v615_v41 = vmul.f32 %v559_v54, %v1423_v29  ;;  %v672_v42 = vadd.f32 %v608_v47, %v559_v54  ;;  %v673_v10 = vadd.f32 %v609_v57, %v559_v54  ;;  %v1809_v31 = vld [vmem:[#allocation13_spill] sm:$0xff]  ;;  %v1810_v57 = vld [vmem:[#allocation15_spill] sm:$0xff] }
 0x246   : > { %v674_v51 = vadd.f32 %v610_v61, %v559_v54  ;;  %v675_v0 = vadd.f32 %v611_v24, %v559_v54  ;;  %v676_v1 = vadd.f32 %v612_v45, %v559_v54  ;;  %v677_v2 = vadd.f32 %v613_v55, %v559_v54  ;;  %v1811_v24 = vld [vmem:[#allocation16_spill] sm:$0xff]  ;;  %v1812_v45 = vld [vmem:[#allocation19_spill] sm:$0xff] }
 0x247   : > { %v678_v50 = vadd.f32 %v614_v37, %v559_v54  ;;  %v679_v4 = vadd.f32 %v615_v41, %v559_v54  ;;  %736 = vst [vmem:[%s1572_s10 + $0x100] sm:$0xff] %v672_v42  ;;  %737 = vst [vmem:[%s1572_s10 + $0x108] sm:$0xff] %v673_v10  ;;  %v616_v63 = vmul.f32 %v564_v39, %v1337_v52  ;;  %v1799_v52 = vld [vmem:[#allocation18_spill] sm:$0xff]  ;;  %v1814_v42 = vld [vmem:[#allocation24_spill] sm:$0xff] }
 0x248   : > { %738 = vst [vmem:[%s1572_s10 + $0x110] sm:$0xff] %v674_v51  ;;  %739 = vst [vmem:[%s1572_s10 + $0x118] sm:$0xff] %v675_v0  ;;  %v617_v32 = vmul.f32 %v564_v39, %v1340_v53  ;;  %v618_v40 = vmul.f32 %v564_v39, %v1352_v59  ;;  %v619_v29 = vmul.f32 %v564_v39, %v1364_v3  ;;  %v1800_v53 = vld [vmem:[#allocation21_spill] sm:$0xff]  ;;  %v574_v25 = vpop.permute.xlu1 %573  ;;  %v1813_v37 = vld [vmem:[#allocation22_spill] sm:$0xff] }
 0x249   : > { %740 = vst [vmem:[%s1572_s10 + $0x120] sm:$0xff] %v676_v1  ;;  %741 = vst [vmem:[%s1572_s10 + $0x128] sm:$0xff] %v677_v2  ;;  %v620_v38 = vmul.f32 %v564_v39, %v1797_v35  ;;  %v621_v44 = vmul.f32 %v564_v39, %v1798_v46  ;;  %v622_v9 = vmul.f32 %v564_v39, %v1799_v52  ;;  %v1815_v51 = vld [vmem:[#allocation26_spill] sm:$0xff]  ;;  %v1816_v1 = vld [vmem:[#allocation27_spill] sm:$0xff] }
 0x24a   : > { %742 = vst [vmem:[%s1572_s10 + $0x130] sm:$0xff] %v678_v50  ;;  %743 = vst [vmem:[%s1572_s10 + $0x138] sm:$0xff] %v679_v4  ;;  %v623_v15 = vmul.f32 %v564_v39, %v1800_v53  ;;  %v680_v59 = vadd.f32 %v616_v63, %v564_v39  ;;  %v681_v3 = vadd.f32 %v617_v32, %v564_v39 }
 0x24b   : > { %v682_v19 = vadd.f32 %v618_v40, %v564_v39  ;;  %v683_v28 = vadd.f32 %v619_v29, %v564_v39  ;;  %v684_v58 = vadd.f32 %v620_v38, %v564_v39  ;;  %v685_v34 = vadd.f32 %v621_v44, %v564_v39 }
 0x24c   : > { %v686_v49 = vadd.f32 %v622_v9, %v564_v39  ;;  %v687_v5 = vadd.f32 %v623_v15, %v564_v39  ;;  %744 = vst [vmem:[%s1572_s10 + $0x140] sm:$0xff] %v680_v59  ;;  %745 = vst [vmem:[%s1572_s10 + $0x148] sm:$0xff] %v681_v3  ;;  %v624_v8 = vmul.f32 %v569_v16, %v1801_v7 }
 0x24d   : > { %746 = vst [vmem:[%s1572_s10 + $0x150] sm:$0xff] %v682_v19  ;;  %747 = vst [vmem:[%s1572_s10 + $0x158] sm:$0xff] %v683_v28  ;;  %v625_v12 = vmul.f32 %v569_v16, %v1802_v20  ;;  %v626_v18 = vmul.f32 %v569_v16, %v1803_v62  ;;  %v627_v56 = vmul.f32 %v569_v16, %v1804_v23 }
 0x24e   : > { %748 = vst [vmem:[%s1572_s10 + $0x160] sm:$0xff] %v684_v58  ;;  %749 = vst [vmem:[%s1572_s10 + $0x168] sm:$0xff] %v685_v34  ;;  %v628_v21 = vmul.f32 %v569_v16, %v1805_v11  ;;  %v629_v33 = vmul.f32 %v569_v16, %v1806_v30  ;;  %v630_v54 = vmul.f32 %v569_v16, %v1807_v43 }
 0x24f   : > { %750 = vst [vmem:[%s1572_s10 + $0x170] sm:$0xff] %v686_v49  ;;  %751 = vst [vmem:[%s1572_s10 + $0x178] sm:$0xff] %v687_v5  ;;  %v631_v6 = vmul.f32 %v569_v16, %v1808_v13  ;;  %v688_v26 = vadd.f32 %v624_v8, %v569_v16  ;;  %v689_v27 = vadd.f32 %v625_v12, %v569_v16 }
 0x250   : > { %v690_v14 = vadd.f32 %v626_v18, %v569_v16  ;;  %v691_v36 = vadd.f32 %v627_v56, %v569_v16  ;;  %v692_v60 = vadd.f32 %v628_v21, %v569_v16  ;;  %v693_v48 = vadd.f32 %v629_v33, %v569_v16 }
 0x251   : > { %v694_v17 = vadd.f32 %v630_v54, %v569_v16  ;;  %v695_v22 = vadd.f32 %v631_v6, %v569_v16  ;;  %752 = vst [vmem:[%s1572_s10 + $0x180] sm:$0xff] %v688_v26  ;;  %753 = vst [vmem:[%s1572_s10 + $0x188] sm:$0xff] %v689_v27  ;;  %v632_v47 = vmul.f32 %v574_v25, %v1809_v31 }
 0x252   : > { %754 = vst [vmem:[%s1572_s10 + $0x190] sm:$0xff] %v690_v14  ;;  %755 = vst [vmem:[%s1572_s10 + $0x198] sm:$0xff] %v691_v36  ;;  %v633_v61 = vmul.f32 %v574_v25, %v1810_v57  ;;  %v634_v39 = vmul.f32 %v574_v25, %v1811_v24  ;;  %v635_v55 = vmul.f32 %v574_v25, %v1812_v45 }
 0x253   : > { %756 = vst [vmem:[%s1572_s10 + $0x1a0] sm:$0xff] %v692_v60  ;;  %757 = vst [vmem:[%s1572_s10 + $0x1a8] sm:$0xff] %v693_v48  ;;  %v636_v41 = vmul.f32 %v574_v25, %v1813_v37  ;;  %v637_v10 = vmul.f32 %v574_v25, %v1814_v42  ;;  %v638_v0 = vmul.f32 %v574_v25, %v1815_v51 }
 0x254   : > { %758 = vst [vmem:[%s1572_s10 + $0x1b0] sm:$0xff] %v694_v17  ;;  %759 = vst [vmem:[%s1572_s10 + $0x1b8] sm:$0xff] %v695_v22  ;;  %v639_v2 = vmul.f32 %v574_v25, %v1816_v1  ;;  %v696_v50 = vadd.f32 %v632_v47, %v574_v25  ;;  %v697_v4 = vadd.f32 %v633_v61, %v574_v25 }
 0x255   : > { %v698_v63 = vadd.f32 %v634_v39, %v574_v25  ;;  %v699_v32 = vadd.f32 %v635_v55, %v574_v25  ;;  %v700_v40 = vadd.f32 %v636_v41, %v574_v25  ;;  %v701_v29 = vadd.f32 %v637_v10, %v574_v25 }
 0x256   : > { %v702_v16 = vadd.f32 %v638_v0, %v574_v25  ;;  %v703_v35 = vadd.f32 %v639_v2, %v574_v25  ;;  %760 = vst [vmem:[%s1572_s10 + $0x1c0] sm:$0xff] %v696_v50  ;;  %761 = vst [vmem:[%s1572_s10 + $0x1c8] sm:$0xff] %v697_v4 }
 0x257   : > { %762 = vst [vmem:[%s1572_s10 + $0x1d0] sm:$0xff] %v698_v63  ;;  %763 = vst [vmem:[%s1572_s10 + $0x1d8] sm:$0xff] %v699_v32 }
 0x258   : > { %764 = vst [vmem:[%s1572_s10 + $0x1e0] sm:$0xff] %v700_v40  ;;  %765 = vst [vmem:[%s1572_s10 + $0x1e8] sm:$0xff] %v701_v29 }
 0x259   : > { %766 = vst [vmem:[%s1572_s10 + $0x1f0] sm:$0xff] %v702_v16  ;;  %767 = vst [vmem:[%s1572_s10 + $0x1f8] sm:$0xff] %v703_v35 }
 0x25a   : > { %1007 = shalt.err (!%p1004_p2)
}
 0x25b   : > { %s1008_s15 = scalar_lea.hbm %s1691_s17, 8192  ;;  %s1012_s7 = scalar_lea.hbm %s1750_s5, 16384 }
 0x25c   : > { %p1009_p4 = scmp.ne.s32.totalorder %s1691_s17, %s1008_s15  ;;  %p1013_p9 = scmp.lt.u32.totalorder %s1691_s17, %s1750_s5 }
 0x25d   : > { %p1014_p1 = scmp.lt.u32.totalorder %s1012_s7, %s1008_s15  ;;  %p1016_p6 = scmp.lt.u32.totalorder %s1008_s15, %s1691_s17 }
 0x25e   : > { %p1010_p5 = pnand %p1009_p4, %p1817_p11 }
 0x25f   : > { %p1015_p3 = por %p1014_p1, %p1013_p9 }
 0x260   : > { %p1011_p7 = pneg %p1010_p5 }
 0x261   : > { %p1017_p12 = por %p1016_p6, %p1015_p3 }
 0x263   : > { %p1018_p13 = pnand %p1017_p12, %p1011_p7 }
 0x265   : > { %1021 = shalt.err (!%p1018_p13)
}
 0x266   : > { %s1067_s25 = smov 1024   ;;  %s1068_s22 = smov 64  }
 0x267   : > { %881 = dma.vmem_to_hbm [thread:$0]  (%p1817_p11), %s1693_s11, 8192, %s1691_s17, %s769_s26, %s1067_s25, %s1067_s25, %s1068_s22  }
 0x268 PF: > { %s797_s13 = sand.u32 1, %s1048_s18   ;;  %p1818_p8 = scmp.ne.s32.totalorder %s1775_s6, 0 }
 0x269   : > { %p1819_p10 = scmp.ge.s32.totalorder %s1060_s21, 2  ;;  %s798_s28 = scalar_lea.sflag [#allocation4], %s797_s13 }
 0x26b   : > { %p888_p0 = pnand %p1819_p10, %p1818_p8 }
 0x26d   : > { %1043 = dma.done.wait (!%p888_p0), %s798_s28, 8192  }
 0x26e   : > { %1045 = vsyncadd (!%p888_p0), %s798_s28, 4294959104  ;;  %p18_p2 = scmp.ge.s32.totalorder %s1124_s24, 4   ;;  %s1820_s18 = smov %s1052_s19 }
 0x26f   : > { %s1821_s19 = smov %s1056_s20  ;;  %s1822_s20 = smov %s1136_s27 }
 0x270   : > { %s1823_s21 = smov %s1124_s24  ;;  %20 = sbr.rel (!%p18_p2) target bundleno = 5 (0x5), region = 85 }
 0x277   :  { %803 = vsyncpa [#allocation3], 1 }
 0x278   :  { %805 = vsyncpa [#allocation3 + $0x1], 1 }
 0x279   :  { %806 = vsyncpa [#allocation4], 1 }
 0x27a   :  { %808 = vsyncpa [#allocation4 + $0x1], 1 }

</bundles_post_ra>
